<compile_context>
chip_gen: v6e
topology: v6e:2x2x1
jax: 0.10.0
libtpu: 0.0.40
codegen_flags: <defaults>
</compile_context>

<pallas_src>
import functools

import jax
import jax.numpy as jnp
from jax import lax
from jax.experimental import pallas as pl
from jax.experimental.pallas import tpu as pltpu

LANES = 128
SUBLANES = 8
MAX_BLOCK_ROWS = 4096    # 2 MiB f32 block; in+out double-buffered stays < 16 MiB (v5e safe)
TARGET_GRID_STEPS = 8    # >=2 steps so v7x megacore sharding + pipelining engage


def _srl(x, amount):
    """Logical right shift on int32 (wrapping int32 arithmetic == uint32 bits)."""
    return lax.shift_right_logical(x, jnp.int32(amount))


def _uniform_from_index(lin, seed):
    """Counter-based PRNG: Weyl step + 2-round mix -> uniform float32 in [0, 1)."""
    h = lin * jnp.int32(-1640531527) + (seed + jnp.int32(0x632BE5AB))  # * 0x9E3779B9
    h = h ^ _srl(h, 16)
    h = h * jnp.int32(0x7FEB352D)
    h = h ^ _srl(h, 15)
    mant = _srl(h, 9) | jnp.int32(0x3F800000)          # float32 bits in [1, 2)
    return lax.bitcast_convert_type(mant, jnp.float32) - 1.0


def _gumbel_train_kernel(seed_ref, x_ref, out_ref, *, flip):
    shape = x_ref.shape
    block_elems = shape[0] * shape[1]
    base = pl.program_id(0) * jnp.int32(block_elems)
    row = lax.broadcasted_iota(jnp.int32, shape, 0)
    col = lax.broadcasted_iota(jnp.int32, shape, 1)
    lin = base + (lax.shift_left(row, jnp.int32(7)) | col)   # row*128 + col (LANES=128)
    u = _uniform_from_index(lin, seed_ref[0])
    x = x_ref[...].astype(jnp.float32)                       # in-register cast (free)
    # (x + logistic_noise) / T > 0  (T>0)   <=>   u * exp(-x) < 1 - u   (single EUP op)
    lhs = u * jnp.exp(-x)
    rhs = 1.0 - u
    cond = (lhs >= rhs) if flip else (lhs < rhs)              # flip handles T < 0
    out_ref[...] = cond.astype(out_ref.dtype)


def _eval_kernel(x_ref, out_ref, *, flip):
    x = x_ref[...]
    # sigmoid(x / T) > 0.5  <=>  x > 0 (T>0) / x < 0 (T<0): no transcendentals, no /T.
    cond = (x < 0) if flip else (x > 0)
    out_ref[...] = cond.astype(out_ref.dtype)


def _row_granularity(dtype):
    """Sublane packing multiple: f32 -> 8, bf16/f16 -> 16, int8/fp8 -> 32."""
    return SUBLANES * max(1, 4 // jnp.dtype(dtype).itemsize)


def _choose_block_rows(rows, gran):
    if rows <= gran:
        return rows                      # full-extent block (block dim == array dim)
    br = pl.cdiv(rows, TARGET_GRID_STEPS)
    br = pl.cdiv(br, gran) * gran
    return max(gran, min(br, MAX_BLOCK_ROWS))


def diff_gumbel_binarize(x, *, seed=0, temperature=1.0, eps=1e-9, training=True,
                         out_dtype=jnp.float32):
    """Forward pass of diffGumbelBinarize (value semantics of the PyTorch module).

    `out_dtype` can be set to bf16/int8 by callers that tolerate a narrower hard
    mask (cuts output HBM traffic); default f32 matches PyTorch `.float()`.
    """
    del eps  # not needed by the 1-exp reformulation (kept for API parity)
    t = float(temperature)
    if t == 0.0:
        raise ValueError("temperature must be nonzero")
    flip = t < 0.0

    orig_shape = x.shape
    flat = x.reshape(-1)                 # metadata-only; keep native dtype (no HBM pass)
    n = flat.shape[0]
    rows = pl.cdiv(n, LANES)
    padded = rows * LANES
    if padded != n:                      # pad at most LANES-1 elements
        flat = jnp.pad(flat, (0, padded - n))
    x2d = flat.reshape(rows, LANES)      # lane-dense (rows, 128) slab

    gran = max(_row_granularity(x.dtype), _row_granularity(out_dtype))
    block_rows = _choose_block_rows(rows, gran)
    block = (block_rows, LANES)
    grid = (pl.cdiv(rows, block_rows),)  # ragged last block is masked by Pallas

    if training:
        seed_arr = jnp.asarray([seed], dtype=jnp.int32)
        out2d = pl.pallas_call(
            functools.partial(_gumbel_train_kernel, flip=flip),
            out_shape=jax.ShapeDtypeStruct((rows, LANES), out_dtype),
            grid_spec=pltpu.PrefetchScalarGridSpec(
                num_scalar_prefetch=1,
                grid=grid,
                in_specs=[pl.BlockSpec(block, lambda i, *_: (i, 0))],
                out_specs=pl.BlockSpec(block, lambda i, *_: (i, 0)),
            ),
            compiler_params=pltpu.CompilerParams(
                dimension_semantics=("parallel",)),
        )(seed_arr, x2d)
    else:
        out2d = pl.pallas_call(
            functools.partial(_eval_kernel, flip=flip),
            out_shape=jax.ShapeDtypeStruct((rows, LANES), out_dtype),
            grid=grid,
            in_specs=[pl.BlockSpec(block, lambda i: (i, 0))],
            out_specs=pl.BlockSpec(block, lambda i: (i, 0)),
            compiler_params=pltpu.CompilerParams(
                dimension_semantics=("parallel",)),
        )(x2d)

    out_flat = out2d.reshape(-1)
    if padded != n:
        out_flat = out_flat[:n]
    return out_flat.reshape(orig_shape)


if __name__ == "__main__":
    key = jax.random.PRNGKey(0)
    x = jax.random.normal(key, (2, 4, 16, 16), dtype=jnp.float32) * 3.0

    # Training mode: stochastic Gumbel binarization; forward value is the hard sample.
    y_train = jax.block_until_ready(
        diff_gumbel_binarize(x, seed=0, temperature=1.0, training=True))
    assert y_train.shape == x.shape and y_train.dtype == jnp.float32
    assert bool(jnp.all((y_train == 0.0) | (y_train == 1.0)))

    # Determinism: same seed -> identical sample.
    y_train2 = jax.block_until_ready(
        diff_gumbel_binarize(x, seed=0, temperature=1.0, training=True))
    assert bool(jnp.all(y_train == y_train2))

    # Distributional sanity: E[hard_i] = sigmoid(x_i); compare means (loose tolerance).
    p_ref = jax.nn.sigmoid(x)
    assert abs(float(y_train.mean()) - float(p_ref.mean())) < 0.12

    # Eval mode: deterministic threshold — exact match vs pure-JAX reference.
    y_eval = jax.block_until_ready(
        diff_gumbel_binarize(x, temperature=1.0, training=False))
    y_ref = (jax.nn.sigmoid(x / 1.0) > 0.5).astype(jnp.float32)
    assert bool(jnp.all(y_eval == y_ref))

    # Ragged / non-128-multiple / bf16-input path (pad + native-dtype in-kernel cast).
    key2 = jax.random.PRNGKey(1)
    xr = (jax.random.normal(key2, (3, 5, 7, 11), dtype=jnp.float32) * 2.0).astype(jnp.bfloat16)
    yr_eval = jax.block_until_ready(
        diff_gumbel_binarize(xr, temperature=2.0, training=False))
    yr_ref = (jax.nn.sigmoid(xr.astype(jnp.float32) / 2.0) > 0.5).astype(jnp.float32)
    assert bool(jnp.all(yr_eval == yr_ref))
    yr_train = jax.block_until_ready(
        diff_gumbel_binarize(xr, seed=7, temperature=0.5, training=True))
    assert yr_train.shape == xr.shape
    assert bool(jnp.all((yr_train == 0.0) | (yr_train == 1.0)))

    print("KERNEL_OK")
</pallas_src>

<mosaic_0001>
module attributes {stable_mosaic.version = 11 : i64} {
  func.func @_gumbel_train_kernel(%arg0: i32, %arg1: memref<1xi32, #tpu.memory_space<smem>>, %arg2: memref<8x128xf32, #tpu.memory_space<vmem>>, %arg3: memref<8x128xf32, #tpu.memory_space<vmem>>) attributes {dimension_semantics = [#tpu.dimension_semantics<parallel>], iteration_bounds = array<i64: 2>, scalar_prefetch = 1 : i64, scratch_operands = 0 : i64, tpu.core_type = #tpu.core_type<tc>, window_params = [{transform_indices = @transform_0, window_bounds = array<i64: 8, 128>}, {transform_indices = @transform_1, window_bounds = array<i64: 8, 128>}]} {
    %c1024_i32 = arith.constant 1024 : i32
    %0 = arith.muli %arg0, %c1024_i32 : i32
    %1 = tpu.iota {dimensions = array<i32: 0>} : vector<8x128xi32>
    %2 = tpu.iota {dimensions = array<i32: 1>} : vector<8x128xi32>
    %c7_i32 = arith.constant 7 : i32
    %3 = vector.broadcast %c7_i32 : i32 to vector<8x128xi32>
    %4 = arith.shli %1, %3 : vector<8x128xi32>
    %5 = arith.ori %4, %2 : vector<8x128xi32>
    %6 = vector.broadcast %0 : i32 to vector<8x128xi32>
    %7 = arith.addi %6, %5 : vector<8x128xi32>
    %c0 = arith.constant 0 : index
    %8 = memref.load %arg1[%c0] : memref<1xi32, #tpu.memory_space<smem>>
    %c-1640531527_i32 = arith.constant -1640531527 : i32
    %9 = vector.broadcast %c-1640531527_i32 : i32 to vector<8x128xi32>
    %10 = arith.muli %7, %9 : vector<8x128xi32>
    %c1663821227_i32 = arith.constant 1663821227 : i32
    %11 = arith.addi %8, %c1663821227_i32 : i32
    %12 = vector.broadcast %11 : i32 to vector<8x128xi32>
    %13 = arith.addi %10, %12 : vector<8x128xi32>
    %c16_i32 = arith.constant 16 : i32
    %14 = vector.broadcast %c16_i32 : i32 to vector<8x128xi32>
    %15 = arith.shrui %13, %14 : vector<8x128xi32>
    %16 = arith.xori %13, %15 : vector<8x128xi32>
    %c2146121005_i32 = arith.constant 2146121005 : i32
    %17 = vector.broadcast %c2146121005_i32 : i32 to vector<8x128xi32>
    %18 = arith.muli %16, %17 : vector<8x128xi32>
    %c15_i32 = arith.constant 15 : i32
    %19 = vector.broadcast %c15_i32 : i32 to vector<8x128xi32>
    %20 = arith.shrui %18, %19 : vector<8x128xi32>
    %21 = arith.xori %18, %20 : vector<8x128xi32>
    %c9_i32 = arith.constant 9 : i32
    %22 = vector.broadcast %c9_i32 : i32 to vector<8x128xi32>
    %23 = arith.shrui %21, %22 : vector<8x128xi32>
    %c1065353216_i32 = arith.constant 1065353216 : i32
    %24 = vector.broadcast %c1065353216_i32 : i32 to vector<8x128xi32>
    %25 = arith.ori %23, %24 : vector<8x128xi32>
    %26 = tpu.bitcast %25 : vector<8x128xi32> -> vector<8x128xf32>
    %cst = arith.constant 1.000000e+00 : f32
    %27 = vector.broadcast %cst : f32 to vector<8x128xf32>
    %28 = arith.subf %26, %27 : vector<8x128xf32>
    %c0_0 = arith.constant 0 : index
    %c0_1 = arith.constant 0 : index
    %29 = vector.load %arg2[%c0_0, %c0_1] : memref<8x128xf32, #tpu.memory_space<vmem>>, vector<8x128xf32>
    %cst_2 = arith.constant 0.000000e+00 : f32
    %30 = vector.broadcast %cst_2 : f32 to vector<8x128xf32>
    %31 = arith.subf %30, %29 : vector<8x128xf32>
    %32 = math.exp %31 : vector<8x128xf32>
    %33 = arith.mulf %28, %32 : vector<8x128xf32>
    %cst_3 = arith.constant 1.000000e+00 : f32
    %34 = vector.broadcast %cst_3 : f32 to vector<8x128xf32>
    %35 = arith.subf %34, %28 : vector<8x128xf32>
    %36 = arith.cmpf olt, %33, %35 : vector<8x128xf32>
    %37 = arith.extui %36 : vector<8x128xi1> to vector<8x128xi32>
    %38 = arith.sitofp %37 : vector<8x128xi32> to vector<8x128xf32>
    %c0_4 = arith.constant 0 : index
    %c0_5 = arith.constant 0 : index
    %39 = vector.load %arg3[%c0_4, %c0_5] : memref<8x128xf32, #tpu.memory_space<vmem>>, vector<8x128xf32>
    tpu.vector_store %arg3[%c0_4, %c0_5], %38 {strides = array<i32>} : memref<8x128xf32, #tpu.memory_space<vmem>>, vector<8x128xf32>,
    return
  }
  func.func @transform_0(%arg0: i32, %arg1: memref<1xi32, #tpu.memory_space<smem>>) -> (i32, i32) {
    %c0_i32 = arith.constant 0 : i32
    %c0_i32_0 = arith.constant 0 : i32
    return %arg0, %c0_i32 : i32, i32
  }
  func.func @transform_1(%arg0: i32, %arg1: memref<1xi32, #tpu.memory_space<smem>>) -> (i32, i32) {
    %c0_i32 = arith.constant 0 : i32
    %c0_i32_0 = arith.constant 0 : i32
    return %arg0, %c0_i32 : i32, i32
  }
}

</mosaic_0001>

<bundles_post_ra>
// kernel: tpu_custom_call.1
= control target key start
LH: loop header
LB: loop body
LE: loop exit
PB: predicated region body
PF: predicated region fallthrough
CT: control target
= control target key end

     0   :  { %s588_s0 = inlined_call_operand.<no memory space> [shape: s32[1], index: 0, kind: input, shape index: {}]   ;;  %s589_s1 = inlined_call_operand.hbm [shape: f32[16,128], index: 1, kind: input, shape index: {}]   ;;  %s590_s2 = inlined_call_operand.hbm [shape: f32[16,128], index: 2, kind: output, shape index: {}]  }
   0x1   :  { %7 = sst [smem:[#allocation3]] %s588_s0 }
   0x2   :  { %8 = vsyncpa [#allocation5], 0 }
   0x3   :  { %10 = vsyncpa [#allocation5 + $0x1], 0 }
   0x4   :  { %11 = vsyncpa [#allocation6], 0 }
   0x5   :  { %13 = vsyncpa [#allocation6 + $0x1], 0  ;;  %s430_s11 = smov 0   ;;  %s432_s12 = smov 0  }
   0x6   :  { %s434_s13 = smov 0   ;;  %s436_s14 = smov 0  }
   0x7 LB: > { %s451_s0 = sadd.s32 4294967295, %s407_s14   ;;  %s251_s15 = sadd.s32 4294967294, %s407_s14   ;;  %s407_s14 = sphi %s436_s14, %s607_s14   ;;  %s403_s13 = sphi %s434_s13, %s606_s13   ;;  %s399_s12 = sphi %s432_s12, %s605_s12   ;;  %s395_s11 = sphi %s430_s11, %s604_s11  }
   0x8   : > { %s455_s16 = sadd.s32 1, %s407_s14   ;;  %s26_s17 = sadd.s32 1, %s403_s13 }
   0x9   : > { %s23_s18 = ssub.s32 %s407_s14, %s455_s16  ;;  %p33_p0 = scmp.ne.s32.totalorder %s403_s13, %s399_s12 }
   0xa   : > { %p24_p1 = scmp.eq.s32.totalorder %s23_s18, 0  ;;  %p34_p2 = scmp.eq.s32.totalorder %s407_s14, 0 }
   0xb   : > { %p39_p3 = scmp.ne.s32.totalorder %s399_s12, %s395_s11  ;;  %p40_p4 = scmp.eq.s32.totalorder %s451_s0, 0 }
   0xc   : > { %s467_s19 = scalar_select %p24_p1, %s403_s13, %s26_s17  }
   0xd   : > { %p469_p5 = por %p34_p2, %p33_p0  ;;  %p473_p6 = por %p40_p4, %p39_p3 }
   0xe   : > { %p63_p7 = scmp.eq.s32.totalorder %s451_s0, 1  ;;  %p69_p8 = scmp.eq.s32.totalorder %s251_s15, 1 }
   0xf   : > { %s594_s21 = scalar_select %p473_p6, 1, 0 }
  0x10   : > { %p278_p10 = scmp.lt.s32.totalorder %s407_s14, 2  ;;  %p480_p11 = por %p63_p7, %p33_p0 }
  0x11   : > { %p484_p12 = por %p69_p8, %p39_p3  ;;  %s89_s24 = sand.u32 1, %s403_s13  }
  0x12   : > { %s595_s22 = scalar_select %p480_p11, 1, 0 }
  0x13   : > { %s596_s23 = scalar_select %p484_p12, 1, 0 }
  0x14   : > { %s255_s25 = sshll.u32 %s407_s14, 7  ;;  %s254_s26 = sshll.u32 %s89_s24, 3 }
  0x15   : > { %s493_s29 = scalar_lea.hbm %s589_s1, %s255_s25  ;;  %s93_s30 = scalar_lea.vmem [#allocation4], %s254_s26 }
  0x16   : > { %s100_s3 = sshll.u32 %s93_s30, 4  ;;  %p497_p13 = pnand %p278_p10, %p469_p5  ;;  %s501_s3 = int_to_ptr.vmem [resolvable:$true] %s100_s3 }
  0x17   : > { %s90_s5 = scalar_lea.sflag [#allocation5], %s89_s24  ;;  %s315_s6 = scalar_lea.hbm %s493_s29, 128 }
  0x18   : > { %p316_p2 = scmp.ne.s32.totalorder %s493_s29, %s315_s6  ;;  %p317_p3 = pneg %p497_p13 }
  0x19   : > { %s320_s9 = scalar_lea.hbm %s589_s1, 256  ;;  %p321_p5 = scmp.lt.s32.totalorder %s493_s29, %s589_s1 }
  0x1a   : > { %p318_p4 = pnand %p317_p3, %p316_p2  ;;  %p322_p8 = scmp.lt.s32.totalorder %s320_s9, %s315_s6 }
  0x1c   : > { %p319_p7 = pneg %p318_p4  ;;  %p323_p10 = por %p322_p8, %p321_p5 }
  0x1e   : > { %p324_p9 = pnand %p323_p10, %p319_p7 }
  0x20   : > { %327 = shalt.err (!%p324_p9)
}
  0x21   : > { %s328_s17 = scalar_lea.vmem %s501_s3, 128  ;;  %s409_s18 = smov [#allocation4]  }
  0x22   : > { %p329_p0 = scmp.ne.s32.totalorder %s501_s3, %s328_s17  ;;  %s333_s20 = sshll.u32 %s409_s18, 4  ;;  %s334_s20 = int_to_ptr.vmem [resolvable:$false] %s333_s20 }
  0x23   : > { %s335_s24 = scalar_lea.vmem %s334_s20, 256  ;;  %p336_p4 = scmp.lt.s32.totalorder %s501_s3, %s334_s20 }
  0x24   : > { %p331_p1 = pnand %p329_p0, %p317_p3  ;;  %p337_p12 = scmp.lt.s32.totalorder %s335_s24, %s328_s17 }
  0x26   : > { %p332_p2 = pneg %p331_p1  ;;  %p338_p11 = por %p337_p12, %p336_p4 }
  0x28   : > { %p339_p6 = pnand %p338_p11, %p332_p2 }
  0x2a   : > { %342 = shalt.err (!%p339_p6)
}
  0x2b   : > { %273 = dma.hbm_to_vmem [thread:$0]  (!%p497_p13), %s493_s29, 128, %s501_s3, %s90_s5  }
  0x2c   : > { %p598_p9 = scmp.lt.s32.totalorder %s407_s14, 3  ;;  %p599_p7 = scmp.ge.s32.totalorder %s407_s14, 1 }
  0x2e   : > { %p106_p0 = pnand %p599_p7, %p598_p9 }
  0x2f   : > { %s528_s25 = sand.u32 (!%p106_p0), 1, %s399_s12   ;;  %p600_p6 = scmp.ne.s32.totalorder (!%p106_p0), %s594_s21, 0 }
  0x30   : > { %109 = sbr.rel (%p106_p0) target bundleno = 101 (0x65), region = 24  ;;  %s257_s26 = sshll.u32 (!%p106_p0), %s528_s25, 3 }
  0x31   : > { %s112_s27 = scalar_lea.sflag (!%p106_p0), [#allocation5], %s528_s25  ;;  %s115_s28 = scalar_lea.vmem (!%p106_p0), [#allocation4], %s257_s26 }
  0x35   : > { %386 = dma.done.wait (%p600_p6), %s112_s27, 128  }
  0x36   : > { %388 = vsyncadd (%p600_p6), %s112_s27, 4294967168  ;;  %v135_v0 = vlaneseq  ;;  %s143_s29 = sld [smem:[#allocation3]]  ;;  %s259_s30 = sshll.u32 %s451_s0, 10  ;;  %v157_v6 = vld [vmem:[%s115_s28] sm:$0xff]  ;;  %v410_v24 = vmov 0.0  }
  0x37   : > { %v141_v4 = vstv %s259_s30  ;;  %v158_v8 = vsub.f32 0.0, %v157_v6  ;;  %s133_s21 = scalar_lea.vmem [#allocation7], %s257_s26  ;;  %s263_s5 = sshll.u32 %s451_s0, 7 }
  0x38   : > { %v136_v1 = vshrl.u32 %v135_v0, 7  ;;  %v138_v2 = vand.u32 127, %v135_v0  ;;  %s181_s4 = sshll.u32 %s133_s21, 4  ;;  %s547_s8 = scalar_lea.hbm %s590_s2, %s263_s5  ;;  %s542_s4 = int_to_ptr.vmem [resolvable:$true] %s181_s4 }
  0x39   : > { %v159_v11 = vmul.f32 1.442695, %v158_v8  ;;  %s168_s9 = scalar_lea.sflag [#allocation6], %s528_s25  ;;  %s343_s10 = scalar_lea.vmem %s542_s4, 128 }
  0x3a   : > { %v139_v3 = vshll.u32 %v136_v1, 7  ;;  %p344_p11 = scmp.ne.s32.totalorder %s542_s4, %s343_s10  ;;  %p601_p12 = scmp.ne.s32.totalorder %s595_s22, 0 }
  0x3b   : > { %313 = vpow2.f32 %v159_v11  ;;  %s411_s0 = smov [#allocation7]  }
  0x3c   : > { %v140_v5 = vor.u32 %v139_v3, %v138_v2  ;;  %s145_s3 = sadd.s32 1663821227, %s143_s29  ;;  %p345_p13 = pnand %p344_p11, %p601_p12 }
  0x3d   : > { %v146_v9 = vstv %s145_s3  ;;  %s347_s15 = sshll.u32 %s411_s0, 4  ;;  %s348_s15 = int_to_ptr.vmem [resolvable:$false] %s347_s15 }
  0x3e   : > { %v142_v7 = vadd.s32 %v141_v4, %v140_v5  ;;  %p346_p1 = pneg %p345_p13  ;;  %s349_s17 = scalar_lea.vmem %s348_s15, 256 }
  0x3f   : > { %p350_p3 = scmp.lt.s32.totalorder %s542_s4, %s348_s15  ;;  %p351_p5 = scmp.lt.s32.totalorder %s349_s17, %s343_s10 }
  0x40   : > { %v144_v10 = vmul.u32 2654435769, %v142_v7 }
  0x41   : > { %p352_p8 = por %p351_p5, %p350_p3 }
  0x42   : > { %v147_v12 = vadd.s32 %v146_v9, %v144_v10 }
  0x43   : > { %p353_p10 = pnand %p352_p8, %p346_p1 }
  0x44   : > { %v148_v13 = vshrl.u32 %v147_v12, 16 }
  0x46   : > { %v149_v14 = vxor.u32 %v148_v13, %v147_v12 }
  0x48   : > { %v150_v15 = vmul.u32 2146121005, %v149_v14  ;;  %v314_v20 = vpop.eup %313 }
  0x4a   : > { %v151_v16 = vshrl.u32 %v150_v15, 15 }
  0x4c   : > { %v152_v17 = vxor.u32 %v151_v16, %v150_v15 }
  0x4e   : > { %v153_v18 = vshrl.u32 %v152_v17, 9 }
  0x50   : > { %v154_v19 = vor.u32 1065353216, %v153_v18 }
  0x52   : > { %v260_v21 = vadd.f32 -1.0, %v154_v19 }
  0x54   : > { %v161_v22 = vmul.f32 %v314_v20, %v260_v21  ;;  %v162_v23 = vsub.f32 1.0, %v260_v21 }
  0x56   : > { %vm163_vm0 = vcmp.lt.f32.partialorder %v161_v22, %v162_v23 }
  0x57   : > { %v261_v25 = vsel %vm163_vm0, 1.0, %v410_v24 }
  0x58   : > { %166 = vst [vmem:[%s133_s21] sm:$0xff] %v261_v25 }
  0x59   : > { %356 = shalt.err (!%p353_p10)
}
  0x5a   : > { %s357_s18 = scalar_lea.hbm %s547_s8, 128  ;;  %s361_s25 = scalar_lea.hbm %s590_s2, 256 }
  0x5b   : > { %p358_p2 = scmp.ne.s32.totalorder %s547_s8, %s357_s18  ;;  %p362_p7 = scmp.lt.s32.totalorder %s547_s8, %s590_s2 }
  0x5c   : > { %p363_p0 = scmp.lt.s32.totalorder %s361_s25, %s357_s18 }
  0x5d   : > { %p359_p4 = pnand %p358_p2, %p601_p12 }
  0x5e   : > { %p364_p6 = por %p363_p0, %p362_p7 }
  0x5f   : > { %p360_p9 = pneg %p359_p4 }
  0x61   : > { %p365_p11 = pnand %p364_p6, %p360_p9 }
  0x63   : > { %368 = shalt.err (!%p365_p11)
}
  0x64   : > { %268 = dma.vmem_to_hbm [thread:$0]  (%p601_p12), %s542_s4, 128, %s547_s8, %s168_s9  }
  0x65 PF: > { %s193_s28 = sand.u32 1, %s395_s11   ;;  %p602_p13 = scmp.ne.s32.totalorder %s596_s23, 0 }
  0x66   : > { %p603_p1 = scmp.ge.s32.totalorder %s407_s14, 2  ;;  %s194_s29 = scalar_lea.sflag [#allocation6], %s193_s28 }
  0x68   : > { %p275_p3 = pnand %p603_p1, %p602_p13 }
  0x6a   : > { %p276_p5 = pneg %p275_p3 }
  0x6c   : > { %390 = dma.done.wait (%p276_p5), %s194_s29, 128  }
  0x6d   : > { %392 = vsyncadd (%p276_p5), %s194_s29, 4294967168  ;;  %p16_p8 = scmp.ge.s32.totalorder %s455_s16, 4   ;;  %s604_s11 = smov %s399_s12 }
  0x6e   : > { %s605_s12 = smov %s403_s13  ;;  %s606_s13 = smov %s467_s19 }
  0x6f   : > { %s607_s14 = smov %s455_s16  ;;  %18 = sbr.rel (!%p16_p8) target bundleno = 7 (0x7), region = 69 }
  0x74   :  { %199 = vsyncpa [#allocation5], 1 }
  0x75   :  { %201 = vsyncpa [#allocation5 + $0x1], 1 }
  0x76   :  { %202 = vsyncpa [#allocation6], 1 }
  0x77   :  { %204 = vsyncpa [#allocation6 + $0x1], 1 }

</bundles_post_ra>
